<compile_context>
chip_gen: v5e
topology: v5e:2x2
jax: 0.10.0
libtpu: 0.0.40
codegen_flags: <defaults>
</compile_context>

<pallas_src>
import functools

import jax
import jax.numpy as jnp
from jax.experimental import pallas as pl
from jax.experimental.pallas import tpu as pltpu

_LANE = 128
# Conservative budgets sized for v7x (64 MiB physical VMEM, 32 MiB default
# scoped); v5e/v6e (128 MiB) have strictly more headroom.
_VMEM_BUDGET_BYTES = 40 * 1024 * 1024
_VMEM_LIMIT_BYTES = 48 * 1024 * 1024


def _round_up(x: int, m: int) -> int:
    return ((x + m - 1) // m) * m


# --------------------------------------------------------------------------
# Kernel: the whole MLP fused; intermediate activations never leave VMEM/vregs.
# --------------------------------------------------------------------------
def _fused_mlp_kernel(*refs, num_layers: int):
    # refs = (x_ref, w0_ref, b0_ref, ..., w_{L-1}_ref, b_{L-1}_ref, out_ref)
    x_ref = refs[0]
    out_ref = refs[-1]
    h = x_ref[...].astype(jnp.bfloat16)              # MXU-native operands
    for l in range(num_layers):
        w_ref = refs[1 + 2 * l]
        b_ref = refs[2 + 2 * l]
        # MXU matmul with f32 accumulation; epilogue stays f32 (v5e VPU has no bf16).
        acc = jnp.dot(h, w_ref[...], preferred_element_type=jnp.float32)
        acc = acc + b_ref[...]
        if l < num_layers - 1:
            h = jnp.maximum(acc, 0.0).astype(jnp.bfloat16)
        else:
            out_ref[...] = acc.astype(out_ref.dtype)


# --------------------------------------------------------------------------
# One-time parameter preparation (hoisted out of the forward path).
# --------------------------------------------------------------------------
def prepare_mlp_params(params):
    """Pad/cast the MLP parameters ONCE (not per forward call).

    params: list of (W_i, b_i) with W_i: (d_i, d_{i+1}) so the kernel computes
    y = x @ W + b (identical to torch's x @ W.T + b with W stored transposed).

    All feature dims are zero-padded to multiples of 128 so every load/store is
    lane-dense and MXU-aligned; zero rows/cols/biases keep the math exact
    through bias-add and ReLU (ReLU(0)=0).  Weights are stored bf16 (MXU
    native); biases f32 (the epilogue runs on the f32 accumulator).
    """
    # Note: for tiny serving shapes (dims 16-64) the interior feature axes
    # could stay unpadded (full-dim blocks) to cut zero-byte weight DMA; kept
    # 128-padded here for exact, fully aligned MXU tiles.
    dims = [params[0][0].shape[0]] + [w.shape[1] for (w, _) in params]
    pdims = [_round_up(d, _LANE) for d in dims]
    padded = []
    for l, (w, b) in enumerate(params):
        pi, po = pdims[l], pdims[l + 1]
        w_p = jnp.pad(w.astype(jnp.bfloat16),
                      ((0, pi - w.shape[0]), (0, po - w.shape[1])))
        b_p = jnp.pad(b.astype(jnp.float32), (0, po - b.shape[0])).reshape(1, po)
        padded.append((w_p, b_p))
    return {"layers": padded, "dims": dims, "pdims": pdims}


# --------------------------------------------------------------------------
# VMEM budgeting + batch-tile selection.
# --------------------------------------------------------------------------
def _vmem_bytes(tm, pdims, out_bytes, weight_buffers, x_bytes):
    w = sum(pdims[l] * pdims[l + 1] for l in range(len(pdims) - 1)) * 2  # bf16
    b = sum(pdims[1:]) * 4                                               # f32
    p_max = max(pdims)
    return (weight_buffers * (w + b)
            + 2 * tm * pdims[0] * x_bytes       # double-buffered input tile
            + 2 * tm * pdims[-1] * out_bytes    # double-buffered output tile
            + 2 * tm * p_max * 4)               # f32 accumulators / live values
                                                # across the unrolled layers


def _pick_tm(m, pdims, out_bytes, x_bytes):
    if m <= 32:
        tm = _round_up(m, 8)   # tiny batch: a single grid step, minimal padding
    else:
        # >=2 grid steps so v7x's second TensorCore gets work; 16-aligned for
        # bf16 sublane packing; tiles up to 512 rows amortize the ~0.35us
        # per-grid-step overhead for large batches.
        tm = min(512, _round_up(pl.cdiv(m, 2), 16))
    # Shrink until the resident set fits the (v7x-sized) VMEM budget.
    while tm > 16 and _vmem_bytes(tm, pdims, out_bytes, 1, x_bytes) > _VMEM_BUDGET_BYTES:
        tm = _round_up(tm // 2, 16)
    return max(tm, 8)


def _make_in_specs(tm, pdims, num_layers, single_buffered_params):
    def _const(i):
        return (0, 0)

    # Grid-invariant weight/bias blocks never get refilled -> a single VMEM
    # buffer suffices; halves their footprint vs default double buffering.
    param_kwargs = (
        dict(pipeline_mode=pl.Buffered(1)) if single_buffered_params else {}
    )
    specs = [pl.BlockSpec((tm, pdims[0]), lambda i: (i, 0))]
    for l in range(num_layers):
        pi, po = pdims[l], pdims[l + 1]
        specs.append(pl.BlockSpec((pi, po), _const, **param_kwargs))
        specs.append(pl.BlockSpec((1, po), _const, **param_kwargs))
    return specs


# --------------------------------------------------------------------------
# Forward pass.
# --------------------------------------------------------------------------
def flexible_mlp_forward(x, prepared, *, out_dtype=jnp.float32):
    """Fused Pallas forward pass mirroring FlexibleMLP.forward."""
    layers, dims, pdims = prepared["layers"], prepared["dims"], prepared["pdims"]
    num_layers = len(layers)
    M, d0 = x.shape
    assert d0 == dims[0], (d0, dims[0])

    out_bytes = jnp.dtype(out_dtype).itemsize
    need_feat_pad = pdims[0] != d0
    x_bytes = 2 if need_feat_pad else x.dtype.itemsize

    tm = _pick_tm(M, pdims, out_bytes, x_bytes)
    m_pad = _round_up(M, tm)

    # Activations: at most ONE fused pad in the wrapper; if nothing needs
    # padding, x goes straight to the kernel (bf16 cast happens in-kernel).
    if need_feat_pad or m_pad != M:
        x_in = jnp.pad(x.astype(jnp.bfloat16),
                       ((0, m_pad - M), (0, pdims[0] - d0)))
    else:
        x_in = x

    inputs = [x_in]
    for (w_p, b_p) in layers:
        inputs += [w_p, b_p]

    flops = 2 * m_pad * sum(pdims[l] * pdims[l + 1] for l in range(num_layers))
    bytes_accessed = (
        x_in.dtype.itemsize * m_pad * pdims[0]
        + sum(w.size * w.dtype.itemsize + b.size * b.dtype.itemsize
              for (w, b) in layers)
        + out_bytes * m_pad * pdims[-1]
    )

    # TODO(synk): once total padded weights exceed ~8-16 MiB (v7x VMEM), switch
    # to a (tm, tn, tk)-tiled grid with an f32 VMEM scratch accumulator instead
    # of keeping all weights VMEM-resident.
    kernel = functools.partial(_fused_mlp_kernel, num_layers=num_layers)
    out_shape = jax.ShapeDtypeStruct((m_pad, pdims[-1]), out_dtype)
    out_spec = pl.BlockSpec((tm, pdims[-1]), lambda i: (i, 0))
    compiler_params = pltpu.CompilerParams(
        dimension_semantics=("parallel",),
        vmem_limit_bytes=_VMEM_LIMIT_BYTES,
    )
    cost = pl.CostEstimate(flops=flops, transcendentals=0,
                           bytes_accessed=bytes_accessed)

    out_p = None
    for single_buffered in (True, False):
        try:
            in_specs = _make_in_specs(tm, pdims, num_layers, single_buffered)
            out_p = pl.pallas_call(
                kernel,
                out_shape=out_shape,
                grid=(m_pad // tm,),
                in_specs=in_specs,
                out_specs=out_spec,
                compiler_params=compiler_params,
                cost_estimate=cost,
            )(*inputs)
            break
        except Exception:
            # Some jax builds may reject single-buffered (Buffered(1)) operands;
            # retry with default double buffering.
            if not single_buffered:
                raise

    # Slice away batch / lane padding.
    return out_p[:M, : dims[-1]]


def init_mlp_params(key, layer_dims):
    """Deterministic init matching nn.Linear shapes: W_i: (d_i, d_{i+1}), b_i: (d_{i+1},)."""
    params = []
    for i in range(len(layer_dims) - 1):
        fan_in, fan_out = layer_dims[i], layer_dims[i + 1]
        key, wk, bk = jax.random.split(key, 3)
        bound = 1.0 / jnp.sqrt(fan_in)  # PyTorch default uniform bound
        w = jax.random.uniform(wk, (fan_in, fan_out), jnp.float32, -bound, bound)
        b = jax.random.uniform(bk, (fan_out,), jnp.float32, -bound, bound)
        params.append((w, b))
    return params


if __name__ == "__main__":
    key = jax.random.PRNGKey(0)
    layer_dims = [32, 64, 48, 16]   # FlexibleMLP([32, 64, 48, 16])
    batch = 8

    key, xk, pk = jax.random.split(key, 3)
    x = jax.random.normal(xk, (batch, layer_dims[0]), jnp.float32)
    params = init_mlp_params(pk, layer_dims)

    # One-time parameter prep (hoisted out of the forward path).
    prepared = prepare_mlp_params(params)

    # bf16 output halves the writeback of the padded, lane-dense output stream
    # (largest HBM stream; matters most on v5e).  Pass out_dtype=jnp.float32 if
    # the consumer needs full precision.
    out = flexible_mlp_forward(x, prepared, out_dtype=jnp.bfloat16)
    out = jax.block_until_ready(out)

    # Reference in plain f32 JAX (loose tolerance: bf16 operands + bf16 output).
    ref = x
    for i, (w, b) in enumerate(params):
        ref = ref @ w + b
        if i < len(params) - 1:
            ref = jnp.maximum(ref, 0.0)

    assert out.shape == (batch, layer_dims[-1])
    out_f32 = out.astype(jnp.float32)
    assert jnp.allclose(out_f32, ref, atol=5e-2, rtol=5e-2), (
        float(jnp.max(jnp.abs(out_f32 - ref)))
    )

    print("KERNEL_OK")
</pallas_src>

<mosaic_0001>
module attributes {stable_mosaic.version = 11 : i64} {
  func.func @_fused_mlp_kernel(%arg0: i32, %arg1: memref<8x128xbf16, #tpu.memory_space<vmem>>, %arg2: memref<128x128xbf16, #tpu.memory_space<vmem>>, %arg3: memref<1x128xf32, #tpu.memory_space<vmem>>, %arg4: memref<128x128xbf16, #tpu.memory_space<vmem>>, %arg5: memref<1x128xf32, #tpu.memory_space<vmem>>, %arg6: memref<128x128xbf16, #tpu.memory_space<vmem>>, %arg7: memref<1x128xf32, #tpu.memory_space<vmem>>, %arg8: memref<8x128xbf16, #tpu.memory_space<vmem>>) attributes {dimension_semantics = [#tpu.dimension_semantics<parallel>], iteration_bounds = array<i64: 1>, scalar_prefetch = 0 : i64, scratch_operands = 0 : i64, tpu.core_type = #tpu.core_type<tc>, window_params = [{transform_indices = @transform_0, window_bounds = array<i64: 8, 128>}, {pipeline_mode = #tpu.pipeline_mode<synchronous>, transform_indices = @transform_1, window_bounds = array<i64: 128, 128>}, {pipeline_mode = #tpu.pipeline_mode<synchronous>, transform_indices = @transform_2, window_bounds = array<i64: 1, 128>}, {pipeline_mode = #tpu.pipeline_mode<synchronous>, transform_indices = @transform_3, window_bounds = array<i64: 128, 128>}, {pipeline_mode = #tpu.pipeline_mode<synchronous>, transform_indices = @transform_4, window_bounds = array<i64: 1, 128>}, {pipeline_mode = #tpu.pipeline_mode<synchronous>, transform_indices = @transform_5, window_bounds = array<i64: 128, 128>}, {pipeline_mode = #tpu.pipeline_mode<synchronous>, transform_indices = @transform_6, window_bounds = array<i64: 1, 128>}, {transform_indices = @transform_7, window_bounds = array<i64: 8, 128>}]} {
    %c0 = arith.constant 0 : index
    %c0_0 = arith.constant 0 : index
    %0 = vector.load %arg1[%c0, %c0_0] : memref<8x128xbf16, #tpu.memory_space<vmem>>, vector<8x128xbf16>
    %c0_1 = arith.constant 0 : index
    %c0_2 = arith.constant 0 : index
    %1 = vector.load %arg2[%c0_1, %c0_2] : memref<128x128xbf16, #tpu.memory_space<vmem>>, vector<128x128xbf16>
    %cst = arith.constant dense<0.000000e+00> : vector<8x128xf32>
    %2 = tpu.matmul %0, %1, %cst {dimension_numbers = #tpu.dot_dimension_numbers<[1], [0], [0], [1], [0, 0, 1, 1], [], []>} : vector<8x128xbf16>, vector<128x128xbf16>, vector<8x128xf32> -> vector<8x128xf32>
    %c0_3 = arith.constant 0 : index
    %c0_4 = arith.constant 0 : index
    %3 = vector.load %arg3[%c0_3, %c0_4] : memref<1x128xf32, #tpu.memory_space<vmem>>, vector<1x128xf32>
    %4 = vector.broadcast %3 : vector<1x128xf32> to vector<8x128xf32>
    %5 = arith.addf %2, %4 : vector<8x128xf32>
    %cst_5 = arith.constant 0.000000e+00 : f32
    %6 = vector.broadcast %cst_5 : f32 to vector<8x128xf32>
    %7 = arith.maximumf %5, %6 : vector<8x128xf32>
    %8 = arith.truncf %7 : vector<8x128xf32> to vector<8x128xbf16>
    %c0_6 = arith.constant 0 : index
    %c0_7 = arith.constant 0 : index
    %9 = vector.load %arg4[%c0_6, %c0_7] : memref<128x128xbf16, #tpu.memory_space<vmem>>, vector<128x128xbf16>
    %cst_8 = arith.constant dense<0.000000e+00> : vector<8x128xf32>
    %10 = tpu.matmul %8, %9, %cst_8 {dimension_numbers = #tpu.dot_dimension_numbers<[1], [0], [0], [1], [0, 0, 1, 1], [], []>} : vector<8x128xbf16>, vector<128x128xbf16>, vector<8x128xf32> -> vector<8x128xf32>
    %c0_9 = arith.constant 0 : index
    %c0_10 = arith.constant 0 : index
    %11 = vector.load %arg5[%c0_9, %c0_10] : memref<1x128xf32, #tpu.memory_space<vmem>>, vector<1x128xf32>
    %12 = vector.broadcast %11 : vector<1x128xf32> to vector<8x128xf32>
    %13 = arith.addf %10, %12 : vector<8x128xf32>
    %cst_11 = arith.constant 0.000000e+00 : f32
    %14 = vector.broadcast %cst_11 : f32 to vector<8x128xf32>
    %15 = arith.maximumf %13, %14 : vector<8x128xf32>
    %16 = arith.truncf %15 : vector<8x128xf32> to vector<8x128xbf16>
    %c0_12 = arith.constant 0 : index
    %c0_13 = arith.constant 0 : index
    %17 = vector.load %arg6[%c0_12, %c0_13] : memref<128x128xbf16, #tpu.memory_space<vmem>>, vector<128x128xbf16>
    %cst_14 = arith.constant dense<0.000000e+00> : vector<8x128xf32>
    %18 = tpu.matmul %16, %17, %cst_14 {dimension_numbers = #tpu.dot_dimension_numbers<[1], [0], [0], [1], [0, 0, 1, 1], [], []>} : vector<8x128xbf16>, vector<128x128xbf16>, vector<8x128xf32> -> vector<8x128xf32>
    %c0_15 = arith.constant 0 : index
    %c0_16 = arith.constant 0 : index
    %19 = vector.load %arg7[%c0_15, %c0_16] : memref<1x128xf32, #tpu.memory_space<vmem>>, vector<1x128xf32>
    %20 = vector.broadcast %19 : vector<1x128xf32> to vector<8x128xf32>
    %21 = arith.addf %18, %20 : vector<8x128xf32>
    %22 = arith.truncf %21 : vector<8x128xf32> to vector<8x128xbf16>
    %c0_17 = arith.constant 0 : index
    %c0_18 = arith.constant 0 : index
    %23 = vector.load %arg8[%c0_17, %c0_18] : memref<8x128xbf16, #tpu.memory_space<vmem>>, vector<8x128xbf16>
    tpu.vector_store %arg8[%c0_17, %c0_18], %22 {strides = array<i32>} : memref<8x128xbf16, #tpu.memory_space<vmem>>, vector<8x128xbf16>,
    return
  }
  func.func @transform_0(%arg0: i32) -> (i32, i32) {
    %c0_i32 = arith.constant 0 : i32
    %c0_i32_0 = arith.constant 0 : i32
    return %arg0, %c0_i32 : i32, i32
  }
  func.func @transform_1(%arg0: i32) -> (i32, i32) {
    %c0_i32 = arith.constant 0 : i32
    %c0_i32_0 = arith.constant 0 : i32
    %c0_i32_1 = arith.constant 0 : i32
    return %c0_i32, %c0_i32_0 : i32, i32
  }
  func.func @transform_2(%arg0: i32) -> (i32, i32) {
    %c0_i32 = arith.constant 0 : i32
    %c0_i32_0 = arith.constant 0 : i32
    %c0_i32_1 = arith.constant 0 : i32
    return %c0_i32, %c0_i32_0 : i32, i32
  }
  func.func @transform_3(%arg0: i32) -> (i32, i32) {
    %c0_i32 = arith.constant 0 : i32
    %c0_i32_0 = arith.constant 0 : i32
    %c0_i32_1 = arith.constant 0 : i32
    return %c0_i32, %c0_i32_0 : i32, i32
  }
  func.func @transform_4(%arg0: i32) -> (i32, i32) {
    %c0_i32 = arith.constant 0 : i32
    %c0_i32_0 = arith.constant 0 : i32
    %c0_i32_1 = arith.constant 0 : i32
    return %c0_i32, %c0_i32_0 : i32, i32
  }
  func.func @transform_5(%arg0: i32) -> (i32, i32) {
    %c0_i32 = arith.constant 0 : i32
    %c0_i32_0 = arith.constant 0 : i32
    %c0_i32_1 = arith.constant 0 : i32
    return %c0_i32, %c0_i32_0 : i32, i32
  }
  func.func @transform_6(%arg0: i32) -> (i32, i32) {
    %c0_i32 = arith.constant 0 : i32
    %c0_i32_0 = arith.constant 0 : i32
    %c0_i32_1 = arith.constant 0 : i32
    return %c0_i32, %c0_i32_0 : i32, i32
  }
  func.func @transform_7(%arg0: i32) -> (i32, i32) {
    %c0_i32 = arith.constant 0 : i32
    %c0_i32_0 = arith.constant 0 : i32
    return %arg0, %c0_i32 : i32, i32
  }
}

module attributes {stable_mosaic.version = 11 : i64} {
  func.func @_fused_mlp_kernel(%arg0: i32, %arg1: memref<8x128xbf16, #tpu.memory_space<vmem>>, %arg2: memref<128x128xbf16, #tpu.memory_space<vmem>>, %arg3: memref<1x128xf32, #tpu.memory_space<vmem>>, %arg4: memref<128x128xbf16, #tpu.memory_space<vmem>>, %arg5: memref<1x128xf32, #tpu.memory_space<vmem>>, %arg6: memref<128x128xbf16, #tpu.memory_space<vmem>>, %arg7: memref<1x128xf32, #tpu.memory_space<vmem>>, %arg8: memref<8x128xbf16, #tpu.memory_space<vmem>>) attributes {dimension_semantics = [#tpu.dimension_semantics<parallel>], iteration_bounds = array<i64: 1>, scalar_prefetch = 0 : i64, scratch_operands = 0 : i64, tpu.core_type = #tpu.core_type<tc>, window_params = [{transform_indices = @transform_0, window_bounds = array<i64: 8, 128>}, {pipeline_mode = #tpu.pipeline_mode<synchronous>, transform_indices = @transform_1, window_bounds = array<i64: 128, 128>}, {pipeline_mode = #tpu.pipeline_mode<synchronous>, transform_indices = @transform_2, window_bounds = array<i64: 1, 128>}, {pipeline_mode = #tpu.pipeline_mode<synchronous>, transform_indices = @transform_3, window_bounds = array<i64: 128, 128>}, {pipeline_mode = #tpu.pipeline_mode<synchronous>, transform_indices = @transform_4, window_bounds = array<i64: 1, 128>}, {pipeline_mode = #tpu.pipeline_mode<synchronous>, transform_indices = @transform_5, window_bounds = array<i64: 128, 128>}, {pipeline_mode = #tpu.pipeline_mode<synchronous>, transform_indices = @transform_6, window_bounds = array<i64: 1, 128>}, {transform_indices = @transform_7, window_bounds = array<i64: 8, 128>}]} {
    %c0 = arith.constant 0 : index
    %c0_0 = arith.constant 0 : index
    %0 = vector.load %arg1[%c0, %c0_0] : memref<8x128xbf16, #tpu.memory_space<vmem>>, vector<8x128xbf16>
    %c0_1 = arith.constant 0 : index
    %c0_2 = arith.constant 0 : index
    %1 = vector.load %arg2[%c0_1, %c0_2] : memref<128x128xbf16, #tpu.memory_space<vmem>>, vector<128x128xbf16>
    %cst = arith.constant dense<0.000000e+00> : vector<8x128xf32>
    %2 = tpu.matmul %0, %1, %cst {dimension_numbers = #tpu.dot_dimension_numbers<[1], [0], [0], [1], [0, 0, 1, 1], [], []>} : vector<8x128xbf16>, vector<128x128xbf16>, vector<8x128xf32> -> vector<8x128xf32>
    %c0_3 = arith.constant 0 : index
    %c0_4 = arith.constant 0 : index
    %3 = vector.load %arg3[%c0_3, %c0_4] : memref<1x128xf32, #tpu.memory_space<vmem>>, vector<1x128xf32>
    %4 = vector.broadcast %3 : vector<1x128xf32> to vector<8x128xf32>
    %5 = arith.addf %2, %4 : vector<8x128xf32>
    %cst_5 = arith.constant 0.000000e+00 : f32
    %6 = vector.broadcast %cst_5 : f32 to vector<8x128xf32>
    %7 = arith.maximumf %5, %6 : vector<8x128xf32>
    %8 = arith.truncf %7 : vector<8x128xf32> to vector<8x128xbf16>
    %c0_6 = arith.constant 0 : index
    %c0_7 = arith.constant 0 : index
    %9 = vector.load %arg4[%c0_6, %c0_7] : memref<128x128xbf16, #tpu.memory_space<vmem>>, vector<128x128xbf16>
    %cst_8 = arith.constant dense<0.000000e+00> : vector<8x128xf32>
    %10 = tpu.matmul %8, %9, %cst_8 {dimension_numbers = #tpu.dot_dimension_numbers<[1], [0], [0], [1], [0, 0, 1, 1], [], []>} : vector<8x128xbf16>, vector<128x128xbf16>, vector<8x128xf32> -> vector<8x128xf32>
    %c0_9 = arith.constant 0 : index
    %c0_10 = arith.constant 0 : index
    %11 = vector.load %arg5[%c0_9, %c0_10] : memref<1x128xf32, #tpu.memory_space<vmem>>, vector<1x128xf32>
    %12 = vector.broadcast %11 : vector<1x128xf32> to vector<8x128xf32>
    %13 = arith.addf %10, %12 : vector<8x128xf32>
    %cst_11 = arith.constant 0.000000e+00 : f32
    %14 = vector.broadcast %cst_11 : f32 to vector<8x128xf32>
    %15 = arith.maximumf %13, %14 : vector<8x128xf32>
    %16 = arith.truncf %15 : vector<8x128xf32> to vector<8x128xbf16>
    %c0_12 = arith.constant 0 : index
    %c0_13 = arith.constant 0 : index
    %17 = vector.load %arg6[%c0_12, %c0_13] : memref<128x128xbf16, #tpu.memory_space<vmem>>, vector<128x128xbf16>
    %cst_14 = arith.constant dense<0.000000e+00> : vector<8x128xf32>
    %18 = tpu.matmul %16, %17, %cst_14 {dimension_numbers = #tpu.dot_dimension_numbers<[1], [0], [0], [1], [0, 0, 1, 1], [], []>} : vector<8x128xbf16>, vector<128x128xbf16>, vector<8x128xf32> -> vector<8x128xf32>
    %c0_15 = arith.constant 0 : index
    %c0_16 = arith.constant 0 : index
    %19 = vector.load %arg7[%c0_15, %c0_16] : memref<1x128xf32, #tpu.memory_space<vmem>>, vector<1x128xf32>
    %20 = vector.broadcast %19 : vector<1x128xf32> to vector<8x128xf32>
    %21 = arith.addf %18, %20 : vector<8x128xf32>
    %22 = arith.truncf %21 : vector<8x128xf32> to vector<8x128xbf16>
    %c0_17 = arith.constant 0 : index
    %c0_18 = arith.constant 0 : index
    %23 = vector.load %arg8[%c0_17, %c0_18] : memref<8x128xbf16, #tpu.memory_space<vmem>>, vector<8x128xbf16>
    tpu.vector_store %arg8[%c0_17, %c0_18], %22 {strides = array<i32>} : memref<8x128xbf16, #tpu.memory_space<vmem>>, vector<8x128xbf16>,
    return
  }
  func.func @transform_0(%arg0: i32) -> (i32, i32) {
    %c0_i32 = arith.constant 0 : i32
    %c0_i32_0 = arith.constant 0 : i32
    return %arg0, %c0_i32 : i32, i32
  }
  func.func @transform_1(%arg0: i32) -> (i32, i32) {
    %c0_i32 = arith.constant 0 : i32
    %c0_i32_0 = arith.constant 0 : i32
    %c0_i32_1 = arith.constant 0 : i32
    return %c0_i32, %c0_i32_0 : i32, i32
  }
  func.func @transform_2(%arg0: i32) -> (i32, i32) {
    %c0_i32 = arith.constant 0 : i32
    %c0_i32_0 = arith.constant 0 : i32
    %c0_i32_1 = arith.constant 0 : i32
    return %c0_i32, %c0_i32_0 : i32, i32
  }
  func.func @transform_3(%arg0: i32) -> (i32, i32) {
    %c0_i32 = arith.constant 0 : i32
    %c0_i32_0 = arith.constant 0 : i32
    %c0_i32_1 = arith.constant 0 : i32
    return %c0_i32, %c0_i32_0 : i32, i32
  }
  func.func @transform_4(%arg0: i32) -> (i32, i32) {
    %c0_i32 = arith.constant 0 : i32
    %c0_i32_0 = arith.constant 0 : i32
    %c0_i32_1 = arith.constant 0 : i32
    return %c0_i32, %c0_i32_0 : i32, i32
  }
  func.func @transform_5(%arg0: i32) -> (i32, i32) {
    %c0_i32 = arith.constant 0 : i32
    %c0_i32_0 = arith.constant 0 : i32
    %c0_i32_1 = arith.constant 0 : i32
    return %c0_i32, %c0_i32_0 : i32, i32
  }
  func.func @transform_6(%arg0: i32) -> (i32, i32) {
    %c0_i32 = arith.constant 0 : i32
    %c0_i32_0 = arith.constant 0 : i32
    %c0_i32_1 = arith.constant 0 : i32
    return %c0_i32, %c0_i32_0 : i32, i32
  }
  func.func @transform_7(%arg0: i32) -> (i32, i32) {
    %c0_i32 = arith.constant 0 : i32
    %c0_i32_0 = arith.constant 0 : i32
    return %arg0, %c0_i32 : i32, i32
  }
}

</mosaic_0001>

<bundles_post_ra>
// kernel: tpu_custom_call.1
= control target key start
LH: loop header
LB: loop body
LE: loop exit
PB: predicated region body
PF: predicated region fallthrough
CT: control target
= control target key end

     0   :  { %12 = vsyncpa [#allocation3], 0  ;;  %s686_s0 = inlined_call_operand.hbm [shape: bf16[8,128], index: 0, kind: input, shape index: {}]   ;;  %s687_s1 = inlined_call_operand.hbm [shape: bf16[128,128], index: 1, kind: input, shape index: {}]   ;;  %s688_s2 = inlined_call_operand.vmem [shape: f32[1,128], index: 2, kind: input, shape index: {}]   ;;  %s689_s3 = inlined_call_operand.hbm [shape: bf16[128,128], index: 3, kind: input, shape index: {}]   ;;  %s690_s4 = inlined_call_operand.vmem [shape: f32[1,128], index: 4, kind: input, shape index: {}]   ;;  %s691_s5 = inlined_call_operand.hbm [shape: bf16[128,128], index: 5, kind: input, shape index: {}]   ;;  %s692_s6 = inlined_call_operand.vmem [shape: f32[1,128], index: 6, kind: input, shape index: {}]   ;;  %s693_s7 = inlined_call_operand.hbm [shape: bf16[8,128], index: 7, kind: output, shape index: {}]  }
   0x1   :  { %13 = vsyncpa [#allocation6], 0 }
   0x2   :  { %14 = vsyncpa [#allocation9], 0  ;;  %s31_s26 = sshll.u32 %s687_s1, 4  ;;  %s32_s26 = int_to_ptr.hbm [resolvable:$true] %s31_s26 }
   0x3   :  { %15 = vsyncpa [#allocation4], 0  ;;  %s615_s27 = smov [#allocation5]   ;;  %s21_s8 = sshll.u32 %s686_s0, 4  ;;  %s22_s8 = int_to_ptr.hbm [resolvable:$true] %s21_s8 }
   0x4   :  { %s33_s28 = sshll.u32 %s615_s27, 4  ;;  %s616_s9 = smov 64   ;;  %s34_s28 = int_to_ptr.vmem [resolvable:$true] %s33_s28 }
   0x5   :  { %s617_s10 = smov 4   ;;  %s618_s11 = smov [#allocation2]  }
   0x6   :  { %39 = dma.hbm_to_vmem [thread:$0]  %s32_s26, 1024, %s34_s28, [#allocation6], %s616_s9, %s616_s9, %s617_s10  }
   0x7   :  { %s23_s12 = sshll.u32 %s618_s11, 4  ;;  %s46_s15 = sshll.u32 %s689_s3, 4  ;;  %s24_s12 = int_to_ptr.vmem [resolvable:$true] %s23_s12  ;;  %s47_s15 = int_to_ptr.hbm [resolvable:$true] %s46_s15 }
   0x8   :  { %26 = dma.hbm_to_vmem [thread:$0]  %s22_s8, 64, %s24_s12, [#allocation3]  }
   0x9   :  { %s61_s17 = sshll.u32 %s691_s5, 4  ;;  %s619_s18 = smov [#allocation7]   ;;  %s62_s17 = int_to_ptr.hbm [resolvable:$true] %s61_s17 }
   0xa   :  { %s48_s19 = sshll.u32 %s619_s18, 4  ;;  %s620_s0 = smov [#allocation8]   ;;  %s49_s19 = int_to_ptr.vmem [resolvable:$true] %s48_s19 }
   0xb   :  { %54 = dma.hbm_to_vmem [thread:$0]  %s47_s15, 1024, %s49_s19, [#allocation6], %s616_s9, %s616_s9, %s617_s10  }
   0xc   :  { %s63_s20 = sshll.u32 %s620_s0, 4  ;;  %s64_s20 = int_to_ptr.vmem [resolvable:$true] %s63_s20 }
   0xd   :  { %69 = dma.hbm_to_vmem [thread:$0]  %s62_s17, 1024, %s64_s20, [#allocation9], %s616_s9, %s616_s9, %s617_s10  }
   0xe   :  { %607 = dma.done.wait [#allocation3], 64  }
   0xf   :  { %608 = vsyncadd [#allocation3], 4294967232 }
  0x10   :  { %609 = dma.done.wait [#allocation6], 2048  }
  0x11   :  { %610 = vsyncadd [#allocation6], 4294965248 }
  0x12   :  { %611 = dma.done.wait [#allocation9], 1024  }
  0x13   :  { %612 = vsyncadd [#allocation9], 4294966272  ;;  %v460_v0 = vld [vmem:[#allocation5 + $0x38] sm:$0xff]  ;;  %v459_v1 = vld [vmem:[#allocation5 + $0x30] sm:$0xff]  ;;  %s621_s24 = smov [#allocation10]   ;;  %s345_s28 = sshll.u32 %s693_s7, 4  ;;  %s346_s28 = int_to_ptr.hbm [resolvable:$true] %s345_s28 }
  0x14   :  { %157 = vmatpush.bf16.msra.mxu0 %v460_v0  ;;  %v468_v2 = vld [vmem:[#allocation7 + $0x38] sm:$0xff]  ;;  %v467_v3 = vld [vmem:[#allocation7 + $0x30] sm:$0xff]  ;;  %v458_v4 = vld [vmem:[#allocation5 + $0x28] sm:$0xff]  ;;  %s343_s25 = sshll.u32 %s621_s24, 4  ;;  %s344_s25 = int_to_ptr.vmem [resolvable:$true] %s343_s25 }
  0x15   :  { %240 = vmatpush.bf16.msra.mxu1 %v468_v2  ;;  %v466_v5 = vld [vmem:[#allocation7 + $0x28] sm:$0xff]  ;;  %v457_v6 = vld [vmem:[#allocation5 + $0x20] sm:$0xff]  ;;  %v456_v8 = vld [vmem:[#allocation5 + $0x18] sm:$0xff] }
  0x16   :  { %v465_v7 = vld [vmem:[#allocation7 + $0x20] sm:$0xff]  ;;  %v464_v9 = vld [vmem:[#allocation7 + $0x18] sm:$0xff]  ;;  %v455_v10 = vld [vmem:[#allocation5 + $0x10] sm:$0xff] }
  0x17   :  { %v463_v11 = vld [vmem:[#allocation7 + $0x10] sm:$0xff]  ;;  %v454_v12 = vld [vmem:[#allocation5 + $0x8] sm:$0xff]  ;;  %v453_v13 = vld [vmem:[#allocation5] sm:$0xff] }
  0x18   :  { %158 = vmatpush.bf16.msra.mxu0 %v459_v1  ;;  %v88_v14 = vld [vmem:[#allocation2] sm:$0xf]  ;;  %v462_v15 = vld [vmem:[#allocation7 + $0x8] sm:$0xff]  ;;  %v461_v16 = vld [vmem:[#allocation7] sm:$0xff] }
  0x19   :  { %241 = vmatpush.bf16.msra.mxu1 %v467_v3  ;;  %v476_v17 = vld [vmem:[#allocation8 + $0x38] sm:$0xff]  ;;  %v475_v18 = vld [vmem:[#allocation8 + $0x30] sm:$0xff]  ;;  %v474_v19 = vld [vmem:[#allocation8 + $0x28] sm:$0xff] }
  0x1a   :  { %323 = vmatpush.bf16.msra.mxu2 %v476_v17  ;;  %v473_v20 = vld [vmem:[#allocation8 + $0x20] sm:$0xff]  ;;  %v472_v21 = vld [vmem:[#allocation8 + $0x18] sm:$0xff]  ;;  %v471_v22 = vld [vmem:[#allocation8 + $0x10] sm:$0xff] }
  0x1b   :  { %v484_v23 = vld [vmem:[%s688_s2] ss:$0 sm:$0xff]  ;;  %v470_v29 = vld [vmem:[#allocation8 + $0x8] sm:$0xff]  ;;  %v469_v30 = vld [vmem:[#allocation8] sm:$0xff] }
  0x1c   :  { %159 = vmatpush.bf16.msra.mxu0 %v458_v4  ;;  %v485_v31 = vld [vmem:[%s690_s4] ss:$0 sm:$0xff] }
  0x1d   :  { %242 = vmatpush.bf16.msra.mxu1 %v466_v5  ;;  %v486_v37 = vld [vmem:[%s692_s6] ss:$0 sm:$0xff] }
  0x1e   :  { %324 = vmatpush.bf16.msra.mxu2 %v475_v18 }
  0x20   :  { %160 = vmatpush.bf16.msra.mxu0 %v457_v6 }
  0x21   :  { %243 = vmatpush.bf16.msra.mxu1 %v465_v7 }
  0x22   :  { %325 = vmatpush.bf16.msra.mxu2 %v474_v19 }
  0x24   :  { %161 = vmatpush.bf16.msra.mxu0 %v456_v8 }
  0x25   :  { %244 = vmatpush.bf16.msra.mxu1 %v464_v9 }
  0x26   :  { %326 = vmatpush.bf16.msra.mxu2 %v473_v20 }
  0x28   :  { %162 = vmatpush.bf16.msra.mxu0 %v455_v10 }
  0x29   :  { %245 = vmatpush.bf16.msra.mxu1 %v463_v11 }
  0x2a   :  { %327 = vmatpush.bf16.msra.mxu2 %v472_v21 }
  0x2c   :  { %163 = vmatpush.bf16.msra.mxu0 %v454_v12 }
  0x2d   :  { %246 = vmatpush.bf16.msra.mxu1 %v462_v15 }
  0x2e   :  { %328 = vmatpush.bf16.msra.mxu2 %v471_v22 }
  0x30   :  { %164 = vmatpush.bf16.msra.mxu0 %v453_v13 }
  0x31   :  { %247 = vmatpush.bf16.msra.mxu1 %v461_v16 }
  0x32   :  { %329 = vmatpush.bf16.msra.mxu2 %v470_v29 }
  0x33   :  { %165 = vmatmul.bf16.vlgmr.msra.gmra.mxu0 %v88_v14 }
  0x36   :  { %330 = vmatpush.bf16.msra.mxu2 %v469_v30 }
  0xb0   :  { %v166_v24 = vpop.f32.mrf.mxu0 }
  0xb1   :  { %v167_v25 = vadd.f32 %v484_v23, %v166_v24 }
  0xb3   :  { %v170_v26 = vmax.f32 %v167_v25, 0.0 }
  0xb5   :  { %v171_v27 = vpack.c.bf16 %v170_v26, %v170_v26 }
  0xb7   :  { %248 = vmatmul.bf16.vlgmr.msra.gmra.mxu1 %v171_v27 }
  0xb8   :  { %v168_v28 = vpop.f32.mrf.mxu0 }
 0x134   :  { %v249_v32 = vpop.f32.mrf.mxu1 }
 0x135   :  { %v250_v33 = vadd.f32 %v485_v31, %v249_v32 }
 0x137   :  { %v253_v34 = vmax.f32 %v250_v33, 0.0 }
 0x139   :  { %v254_v35 = vpack.c.bf16 %v253_v34, %v253_v34 }
 0x13b   :  { %331 = vmatmul.bf16.vlgmr.msra.gmra.mxu2 %v254_v35 }
 0x13c   :  { %v251_v36 = vpop.f32.mrf.mxu1 }
 0x1be   :  { %v332_v38 = vpop.f32.mrf.mxu2 }
 0x1bf   :  { %v333_v39 = vadd.f32 %v486_v37, %v332_v38 }
 0x1c1   :  { %v336_v40 = vpack.c.bf16 %v333_v39, %v333_v39 }
 0x1c3   :  { %337 = vst [vmem:[#allocation10] sm:$0xf] %v336_v40 }
 0x1c4   :  { %348 = dma.vmem_to_hbm [thread:$0]  %s344_s25, 64, %s346_s28, [#allocation4]  }
 0x1c6   :  { %v334_v41 = vpop.f32.mrf.mxu2 }
 0x1c7   :  { %613 = dma.done.wait [#allocation4], 64  }
 0x1c8   :  { %614 = vsyncadd [#allocation4], 4294967232 }
 0x1c9   :  { %353 = vsyncpa [#allocation3], 1 }
 0x1ca   :  { %354 = vsyncpa [#allocation6], 1 }
 0x1cb   :  { %355 = vsyncpa [#allocation9], 1 }
 0x1cc   :  { %356 = vsyncpa [#allocation4], 1 }

// kernel: tpu_custom_call.1
= control target key start
LH: loop header
LB: loop body
LE: loop exit
PB: predicated region body
PF: predicated region fallthrough
CT: control target
= control target key end

     0   :  { %12 = vsyncpa [#allocation3], 0  ;;  %s686_s0 = inlined_call_operand.hbm [shape: bf16[8,128], index: 0, kind: input, shape index: {}]   ;;  %s687_s1 = inlined_call_operand.hbm [shape: bf16[128,128], index: 1, kind: input, shape index: {}]   ;;  %s688_s2 = inlined_call_operand.vmem [shape: f32[1,128], index: 2, kind: input, shape index: {}]   ;;  %s689_s3 = inlined_call_operand.hbm [shape: bf16[128,128], index: 3, kind: input, shape index: {}]   ;;  %s690_s4 = inlined_call_operand.vmem [shape: f32[1,128], index: 4, kind: input, shape index: {}]   ;;  %s691_s5 = inlined_call_operand.hbm [shape: bf16[128,128], index: 5, kind: input, shape index: {}]   ;;  %s692_s6 = inlined_call_operand.vmem [shape: f32[1,128], index: 6, kind: input, shape index: {}]   ;;  %s693_s7 = inlined_call_operand.hbm [shape: bf16[8,128], index: 7, kind: output, shape index: {}]  }
   0x1   :  { %13 = vsyncpa [#allocation6], 0 }
   0x2   :  { %14 = vsyncpa [#allocation9], 0  ;;  %s31_s26 = sshll.u32 %s687_s1, 4  ;;  %s32_s26 = int_to_ptr.hbm [resolvable:$true] %s31_s26 }
   0x3   :  { %15 = vsyncpa [#allocation4], 0  ;;  %s615_s27 = smov [#allocation5]   ;;  %s21_s8 = sshll.u32 %s686_s0, 4  ;;  %s22_s8 = int_to_ptr.hbm [resolvable:$true] %s21_s8 }
   0x4   :  { %s33_s28 = sshll.u32 %s615_s27, 4  ;;  %s616_s9 = smov 64   ;;  %s34_s28 = int_to_ptr.vmem [resolvable:$true] %s33_s28 }
   0x5   :  { %s617_s10 = smov 4   ;;  %s618_s11 = smov [#allocation2]  }
   0x6   :  { %39 = dma.hbm_to_vmem [thread:$0]  %s32_s26, 1024, %s34_s28, [#allocation6], %s616_s9, %s616_s9, %s617_s10  }
   0x7   :  { %s23_s12 = sshll.u32 %s618_s11, 4  ;;  %s46_s15 = sshll.u32 %s689_s3, 4  ;;  %s24_s12 = int_to_ptr.vmem [resolvable:$true] %s23_s12  ;;  %s47_s15 = int_to_ptr.hbm [resolvable:$true] %s46_s15 }
   0x8   :  { %26 = dma.hbm_to_vmem [thread:$0]  %s22_s8, 64, %s24_s12, [#allocation3]  }
   0x9   :  { %s61_s17 = sshll.u32 %s691_s5, 4  ;;  %s619_s18 = smov [#allocation7]   ;;  %s62_s17 = int_to_ptr.hbm [resolvable:$true] %s61_s17 }
   0xa   :  { %s48_s19 = sshll.u32 %s619_s18, 4  ;;  %s620_s0 = smov [#allocation8]   ;;  %s49_s19 = int_to_ptr.vmem [resolvable:$true] %s48_s19 }
   0xb   :  { %54 = dma.hbm_to_vmem [thread:$0]  %s47_s15, 1024, %s49_s19, [#allocation6], %s616_s9, %s616_s9, %s617_s10  }
   0xc   :  { %s63_s20 = sshll.u32 %s620_s0, 4  ;;  %s64_s20 = int_to_ptr.vmem [resolvable:$true] %s63_s20 }
   0xd   :  { %69 = dma.hbm_to_vmem [thread:$0]  %s62_s17, 1024, %s64_s20, [#allocation9], %s616_s9, %s616_s9, %s617_s10  }
   0xe   :  { %607 = dma.done.wait [#allocation3], 64  }
   0xf   :  { %608 = vsyncadd [#allocation3], 4294967232 }
  0x10   :  { %609 = dma.done.wait [#allocation6], 2048  }
  0x11   :  { %610 = vsyncadd [#allocation6], 4294965248 }
  0x12   :  { %611 = dma.done.wait [#allocation9], 1024  }
  0x13   :  { %612 = vsyncadd [#allocation9], 4294966272  ;;  %v460_v0 = vld [vmem:[#allocation5 + $0x38] sm:$0xff]  ;;  %v459_v1 = vld [vmem:[#allocation5 + $0x30] sm:$0xff]  ;;  %s621_s24 = smov [#allocation10]   ;;  %s345_s28 = sshll.u32 %s693_s7, 4  ;;  %s346_s28 = int_to_ptr.hbm [resolvable:$true] %s345_s28 }
  0x14   :  { %157 = vmatpush.bf16.msra.mxu0 %v460_v0  ;;  %v468_v2 = vld [vmem:[#allocation7 + $0x38] sm:$0xff]  ;;  %v467_v3 = vld [vmem:[#allocation7 + $0x30] sm:$0xff]  ;;  %v458_v4 = vld [vmem:[#allocation5 + $0x28] sm:$0xff]  ;;  %s343_s25 = sshll.u32 %s621_s24, 4  ;;  %s344_s25 = int_to_ptr.vmem [resolvable:$true] %s343_s25 }
  0x15   :  { %240 = vmatpush.bf16.msra.mxu1 %v468_v2  ;;  %v466_v5 = vld [vmem:[#allocation7 + $0x28] sm:$0xff]  ;;  %v457_v6 = vld [vmem:[#allocation5 + $0x20] sm:$0xff]  ;;  %v456_v8 = vld [vmem:[#allocation5 + $0x18] sm:$0xff] }
  0x16   :  { %v465_v7 = vld [vmem:[#allocation7 + $0x20] sm:$0xff]  ;;  %v464_v9 = vld [vmem:[#allocation7 + $0x18] sm:$0xff]  ;;  %v455_v10 = vld [vmem:[#allocation5 + $0x10] sm:$0xff] }
  0x17   :  { %v463_v11 = vld [vmem:[#allocation7 + $0x10] sm:$0xff]  ;;  %v454_v12 = vld [vmem:[#allocation5 + $0x8] sm:$0xff]  ;;  %v453_v13 = vld [vmem:[#allocation5] sm:$0xff] }
  0x18   :  { %158 = vmatpush.bf16.msra.mxu0 %v459_v1  ;;  %v88_v14 = vld [vmem:[#allocation2] sm:$0xf]  ;;  %v462_v15 = vld [vmem:[#allocation7 + $0x8] sm:$0xff]  ;;  %v461_v16 = vld [vmem:[#allocation7] sm:$0xff] }
  0x19   :  { %241 = vmatpush.bf16.msra.mxu1 %v467_v3  ;;  %v476_v17 = vld [vmem:[#allocation8 + $0x38] sm:$0xff]  ;;  %v475_v18 = vld [vmem:[#allocation8 + $0x30] sm:$0xff]  ;;  %v474_v19 = vld [vmem:[#allocation8 + $0x28] sm:$0xff] }
  0x1a   :  { %323 = vmatpush.bf16.msra.mxu2 %v476_v17  ;;  %v473_v20 = vld [vmem:[#allocation8 + $0x20] sm:$0xff]  ;;  %v472_v21 = vld [vmem:[#allocation8 + $0x18] sm:$0xff]  ;;  %v471_v22 = vld [vmem:[#allocation8 + $0x10] sm:$0xff] }
  0x1b   :  { %v484_v23 = vld [vmem:[%s688_s2] ss:$0 sm:$0xff]  ;;  %v470_v29 = vld [vmem:[#allocation8 + $0x8] sm:$0xff]  ;;  %v469_v30 = vld [vmem:[#allocation8] sm:$0xff] }
  0x1c   :  { %159 = vmatpush.bf16.msra.mxu0 %v458_v4  ;;  %v485_v31 = vld [vmem:[%s690_s4] ss:$0 sm:$0xff] }
  0x1d   :  { %242 = vmatpush.bf16.msra.mxu1 %v466_v5  ;;  %v486_v37 = vld [vmem:[%s692_s6] ss:$0 sm:$0xff] }
  0x1e   :  { %324 = vmatpush.bf16.msra.mxu2 %v475_v18 }
  0x20   :  { %160 = vmatpush.bf16.msra.mxu0 %v457_v6 }
  0x21   :  { %243 = vmatpush.bf16.msra.mxu1 %v465_v7 }
  0x22   :  { %325 = vmatpush.bf16.msra.mxu2 %v474_v19 }
  0x24   :  { %161 = vmatpush.bf16.msra.mxu0 %v456_v8 }
  0x25   :  { %244 = vmatpush.bf16.msra.mxu1 %v464_v9 }
  0x26   :  { %326 = vmatpush.bf16.msra.mxu2 %v473_v20 }
  0x28   :  { %162 = vmatpush.bf16.msra.mxu0 %v455_v10 }
  0x29   :  { %245 = vmatpush.bf16.msra.mxu1 %v463_v11 }
  0x2a   :  { %327 = vmatpush.bf16.msra.mxu2 %v472_v21 }
  0x2c   :  { %163 = vmatpush.bf16.msra.mxu0 %v454_v12 }
  0x2d   :  { %246 = vmatpush.bf16.msra.mxu1 %v462_v15 }
  0x2e   :  { %328 = vmatpush.bf16.msra.mxu2 %v471_v22 }
  0x30   :  { %164 = vmatpush.bf16.msra.mxu0 %v453_v13 }
  0x31   :  { %247 = vmatpush.bf16.msra.mxu1 %v461_v16 }
  0x32   :  { %329 = vmatpush.bf16.msra.mxu2 %v470_v29 }
  0x33   :  { %165 = vmatmul.bf16.vlgmr.msra.gmra.mxu0 %v88_v14 }
  0x36   :  { %330 = vmatpush.bf16.msra.mxu2 %v469_v30 }
  0xb0   :  { %v166_v24 = vpop.f32.mrf.mxu0 }
  0xb1   :  { %v167_v25 = vadd.f32 %v484_v23, %v166_v24 }
  0xb3   :  { %v170_v26 = vmax.f32 %v167_v25, 0.0 }
  0xb5   :  { %v171_v27 = vpack.c.bf16 %v170_v26, %v170_v26 }
  0xb7   :  { %248 = vmatmul.bf16.vlgmr.msra.gmra.mxu1 %v171_v27 }
  0xb8   :  { %v168_v28 = vpop.f32.mrf.mxu0 }
 0x134   :  { %v249_v32 = vpop.f32.mrf.mxu1 }
 0x135   :  { %v250_v33 = vadd.f32 %v485_v31, %v249_v32 }
 0x137   :  { %v253_v34 = vmax.f32 %v250_v33, 0.0 }
 0x139   :  { %v254_v35 = vpack.c.bf16 %v253_v34, %v253_v34 }
 0x13b   :  { %331 = vmatmul.bf16.vlgmr.msra.gmra.mxu2 %v254_v35 }
 0x13c   :  { %v251_v36 = vpop.f32.mrf.mxu1 }
 0x1be   :  { %v332_v38 = vpop.f32.mrf.mxu2 }
 0x1bf   :  { %v333_v39 = vadd.f32 %v486_v37, %v332_v38 }
 0x1c1   :  { %v336_v40 = vpack.c.bf16 %v333_v39, %v333_v39 }
 0x1c3   :  { %337 = vst [vmem:[#allocation10] sm:$0xf] %v336_v40 }
 0x1c4   :  { %348 = dma.vmem_to_hbm [thread:$0]  %s344_s25, 64, %s346_s28, [#allocation4]  }
 0x1c6   :  { %v334_v41 = vpop.f32.mrf.mxu2 }
 0x1c7   :  { %613 = dma.done.wait [#allocation4], 64  }
 0x1c8   :  { %614 = vsyncadd [#allocation4], 4294967232 }
 0x1c9   :  { %353 = vsyncpa [#allocation3], 1 }
 0x1ca   :  { %354 = vsyncpa [#allocation6], 1 }
 0x1cb   :  { %355 = vsyncpa [#allocation9], 1 }
 0x1cc   :  { %356 = vsyncpa [#allocation4], 1 }

</bundles_post_ra>
